<compile_context>
chip_gen: v7x
topology: tpu7x:2x2x1
jax: 0.10.0
libtpu: 0.0.40
codegen_flags: <defaults>
</compile_context>

<pallas_src>
import functools

import jax
import jax.numpy as jnp
from jax.experimental import pallas as pl
from jax.experimental.pallas import tpu as pltpu

EPS = 1e-5


def _round_up(x, m):
    return (x + m - 1) // m * m


# --------------------- pass 1: conv GEMM + global BN statistics ---------------------
def _conv_stats_kernel(p_ref, w_ref, g_ref, beta_ref,
                       y_ref, s1_ref, s2_ref,
                       *, tm, m_valid, need_row_mask):
    i = pl.program_id(0)

    # conv tile on the MXU: [tm, K_pad] @ [K_pad, C_pad], f32 accumulation.
    # Conv bias intentionally omitted: it cancels exactly under training-mode BN.
    y = jnp.dot(p_ref[...], w_ref[...], preferred_element_type=jnp.float32)
    y_ref[...] = y                        # lane-dense store (C_pad multiple of 128)

    @pl.when(i == 0)
    def _init():
        s1_ref[...] = jnp.zeros_like(s1_ref)
        s2_ref[...] = jnp.zeros_like(s2_ref)

    # exclude zero-padded M rows from the statistics (only traced if padding exists)
    if need_row_mask:
        rows = i * tm + jax.lax.broadcasted_iota(jnp.int32, y.shape, 0)
        y_stat = jnp.where(rows < m_valid, y, 0.0)
    else:
        y_stat = y

    s1_ref[...] += jnp.sum(y_stat, axis=0, keepdims=True)            # sum
    s2_ref[...] += jnp.sum(y_stat * y_stat, axis=0, keepdims=True)   # sum of squares

    # last tile: convert (sum, sumsq) -> per-channel affine (scale, shift)
    @pl.when(i == pl.num_programs(0) - 1)
    def _finalize():
        inv_m = 1.0 / float(m_valid)
        mean = s1_ref[...] * inv_m
        var = jnp.maximum(s2_ref[...] * inv_m - mean * mean, 0.0)
        inv_std = jax.lax.rsqrt(var + EPS)
        scale = g_ref[...] * inv_std
        shift = beta_ref[...] - mean * scale
        s1_ref[...] = scale
        s2_ref[...] = shift


# --------------------- pass 2: normalize + ReLU (in place) ---------------------
def _bn_relu_kernel(y_ref, scale_ref, shift_ref, o_ref):
    o_ref[...] = jnp.maximum(
        y_ref[...] * scale_ref[...] + shift_ref[...], 0.0
    ).astype(o_ref.dtype)


# --------------------- wrapper ---------------------
def _im2col_nhwc(x_nhwc, kh, kw, stride, padding, dilation):
    n, h, w, cin = x_nhwc.shape
    oh = (h + 2 * padding - dilation * (kh - 1) - 1) // stride + 1
    ow = (w + 2 * padding - dilation * (kw - 1) - 1) // stride + 1
    xp = jnp.pad(x_nhwc, ((0, 0), (padding, padding), (padding, padding), (0, 0)))
    cols = []
    for i in range(kh):
        for j in range(kw):
            hs = i * dilation
            ws = j * dilation
            sl = xp[:, hs:hs + (oh - 1) * stride + 1:stride,
                       ws:ws + (ow - 1) * stride + 1:stride, :]
            cols.append(sl)
    patches = jnp.concatenate(cols, axis=-1)          # [N, OH, OW, KH*KW*Cin]
    return patches.reshape(n * oh * ow, kh * kw * cin), oh, ow


@functools.partial(jax.jit, static_argnames=("stride", "padding", "dilation", "tm"))
def basic_cnn_layer_forward(x_nchw, weight_oihw, bias, gamma, beta,
                            *, stride=1, padding=0, dilation=1, tm=1024):
    """Equivalent of basic_cnn_layer.forward.  x is NCHW (PyTorch convention)."""
    del bias  # exact no-op: training-mode BatchNorm subtracts the per-channel mean
    n, cin, h, w = x_nchw.shape
    cout, _, kh, kw = weight_oihw.shape

    # glue: layout + im2col (data movement only; fused by XLA under jit)
    x_nhwc = jnp.transpose(x_nchw, (0, 2, 3, 1))
    patches, oh, ow = _im2col_nhwc(x_nhwc, kh, kw, stride, padding, dilation)

    m = n * oh * ow
    k = kh * kw * cin

    # pad to TPU-friendly shapes: K, Cout -> multiple of 128 lanes, M -> multiple of tm
    k_pad = _round_up(k, 128)
    c_pad = _round_up(cout, 128)
    tm = max(8, min(tm, _round_up(m, 8)))
    m_pad = _round_up(m, tm)

    patches = jnp.pad(patches, ((0, m_pad - m), (0, k_pad - k)))
    w_mat = jnp.transpose(weight_oihw, (2, 3, 1, 0)).reshape(k, cout)   # K=(kh,kw,cin)
    w_mat = jnp.pad(w_mat, ((0, k_pad - k), (0, c_pad - cout)))
    g_row = jnp.pad(gamma.reshape(1, cout), ((0, 0), (0, c_pad - cout)))
    bt_row = jnp.pad(beta.reshape(1, cout), ((0, 0), (0, c_pad - cout)))

    grid = (m_pad // tm,)
    kern1 = functools.partial(_conv_stats_kernel, tm=tm, m_valid=m,
                              need_row_mask=(m_pad != m))
    cparams_acc = pltpu.CompilerParams(
        dimension_semantics=("arbitrary",),          # stats accumulate across M tiles
        vmem_limit_bytes=32 * 1024 * 1024,           # safe on v7x (64 MiB physical)
    )
    cparams_par = pltpu.CompilerParams(
        dimension_semantics=("parallel",),           # independent tiles (megacore)
        vmem_limit_bytes=32 * 1024 * 1024,
    )

    # ---- pass 1: conv GEMM, accumulate global per-channel sum / sumsq ----
    conv_out, scale_row, shift_row = pl.pallas_call(
        kern1,
        out_shape=(
            jax.ShapeDtypeStruct((m_pad, c_pad), jnp.float32),
            jax.ShapeDtypeStruct((1, c_pad), jnp.float32),
            jax.ShapeDtypeStruct((1, c_pad), jnp.float32),
        ),
        grid_spec=pltpu.PrefetchScalarGridSpec(
            num_scalar_prefetch=0,
            grid=grid,
            in_specs=[
                pl.BlockSpec((tm, k_pad), lambda i: (i, 0)),     # patches tile (streamed)
                pl.BlockSpec((k_pad, c_pad), lambda i: (0, 0)),  # weight (resident)
                pl.BlockSpec((1, c_pad), lambda i: (0, 0)),      # gamma
                pl.BlockSpec((1, c_pad), lambda i: (0, 0)),      # beta
            ],
            out_specs=[
                pl.BlockSpec((tm, c_pad), lambda i: (i, 0)),     # conv output tile
                pl.BlockSpec((1, c_pad), lambda i: (0, 0)),      # accumulator -> scale
                pl.BlockSpec((1, c_pad), lambda i: (0, 0)),      # accumulator -> shift
            ],
        ),
        compiler_params=cparams_acc,
    )(patches, w_mat, g_row, bt_row)

    # ---- pass 2: y*scale + shift, ReLU; normalizes the conv buffer in place ----
    out_flat = pl.pallas_call(
        _bn_relu_kernel,
        out_shape=jax.ShapeDtypeStruct((m_pad, c_pad), jnp.float32),
        grid_spec=pltpu.PrefetchScalarGridSpec(
            num_scalar_prefetch=0,
            grid=grid,
            in_specs=[
                pl.BlockSpec((tm, c_pad), lambda i: (i, 0)),
                pl.BlockSpec((1, c_pad), lambda i: (0, 0)),
                pl.BlockSpec((1, c_pad), lambda i: (0, 0)),
            ],
            out_specs=pl.BlockSpec((tm, c_pad), lambda i: (i, 0)),
        ),
        input_output_aliases={0: 0},                 # reuse conv_out's HBM buffer
        compiler_params=cparams_par,
    )(conv_out, scale_row, shift_row)

    # glue: drop padding, back to PyTorch NCHW
    out = out_flat[:m, :cout].reshape(n, oh, ow, cout).transpose(0, 3, 1, 2)
    return out


# --------------------- pure-JAX reference ---------------------
def _reference(x_nchw, weight_oihw, bias, gamma, beta, *, stride, padding, dilation):
    y = jax.lax.conv_general_dilated(
        x_nchw, weight_oihw, window_strides=(stride, stride),
        padding=[(padding, padding), (padding, padding)],
        rhs_dilation=(dilation, dilation),
        dimension_numbers=("NCHW", "OIHW", "NCHW"))
    y = y + bias.reshape(1, -1, 1, 1)
    mean = jnp.mean(y, axis=(0, 2, 3), keepdims=True)
    var = jnp.mean((y - mean) ** 2, axis=(0, 2, 3), keepdims=True)
    y = (y - mean) * jax.lax.rsqrt(var + EPS)
    y = y * gamma.reshape(1, -1, 1, 1) + beta.reshape(1, -1, 1, 1)
    return jnp.maximum(y, 0.0)


if __name__ == "__main__":
    # module config: basic_cnn_layer(input_channel=4, out_channels=8,
    #                                kernel_size=3, stride=1, padding=1, dilation=1)
    N, CIN, H, W = 2, 4, 16, 16
    COUT, KSIZE, STRIDE, PAD, DIL = 8, 3, 1, 1, 1

    key = jax.random.PRNGKey(0)
    kx, kw, kb = jax.random.split(key, 3)

    x = jax.random.normal(kx, (N, CIN, H, W), dtype=jnp.float32)

    # PyTorch Conv2d default init: U(-b, b), b = 1/sqrt(fan_in)
    fan_in = CIN * KSIZE * KSIZE
    bound = 1.0 / (fan_in ** 0.5)
    weight = jax.random.uniform(kw, (COUT, CIN, KSIZE, KSIZE),
                                minval=-bound, maxval=bound, dtype=jnp.float32)
    bias = jax.random.uniform(kb, (COUT,), minval=-bound, maxval=bound,
                              dtype=jnp.float32)
    gamma = jnp.ones((COUT,), jnp.float32)   # BatchNorm2d default weight
    beta = jnp.zeros((COUT,), jnp.float32)   # BatchNorm2d default bias

    # tm=128 at this toy size exercises the multi-tile stats accumulation path
    # (M = 2*16*16 = 512 -> grid of 4 tiles).
    out = basic_cnn_layer_forward(x, weight, bias, gamma, beta,
                                  stride=STRIDE, padding=PAD, dilation=DIL, tm=128)
    out = jax.block_until_ready(out)

    ref = _reference(x, weight, bias, gamma, beta,
                     stride=STRIDE, padding=PAD, dilation=DIL)
    assert out.shape == (N, COUT, H, W)
    assert jnp.allclose(out, ref, atol=1e-4, rtol=1e-4), "mismatch vs reference"

    print("KERNEL_OK")
</pallas_src>

<mosaic_0001>
module attributes {stable_mosaic.version = 11 : i64} {
  func.func @_conv_stats_kernel(%arg0: i32, %arg1: memref<128x128xf32, #tpu.memory_space<vmem>>, %arg2: memref<128x128xf32, #tpu.memory_space<vmem>>, %arg3: memref<1x128xf32, #tpu.memory_space<vmem>>, %arg4: memref<1x128xf32, #tpu.memory_space<vmem>>, %arg5: memref<128x128xf32, #tpu.memory_space<vmem>>, %arg6: memref<1x128xf32, #tpu.memory_space<vmem>>, %arg7: memref<1x128xf32, #tpu.memory_space<vmem>>) attributes {dimension_semantics = [#tpu.dimension_semantics<arbitrary>], iteration_bounds = array<i64: 4>, scalar_prefetch = 0 : i64, scratch_operands = 0 : i64, tpu.core_type = #tpu.core_type<tc>, window_params = [{transform_indices = @transform_0, window_bounds = array<i64: 128, 128>}, {pipeline_mode = #tpu.pipeline_mode<synchronous>, transform_indices = @transform_1, window_bounds = array<i64: 128, 128>}, {pipeline_mode = #tpu.pipeline_mode<synchronous>, transform_indices = @transform_2, window_bounds = array<i64: 1, 128>}, {pipeline_mode = #tpu.pipeline_mode<synchronous>, transform_indices = @transform_3, window_bounds = array<i64: 1, 128>}, {transform_indices = @transform_4, window_bounds = array<i64: 128, 128>}, {pipeline_mode = #tpu.pipeline_mode<synchronous>, transform_indices = @transform_5, window_bounds = array<i64: 1, 128>}, {pipeline_mode = #tpu.pipeline_mode<synchronous>, transform_indices = @transform_6, window_bounds = array<i64: 1, 128>}]} {
    %c0 = arith.constant 0 : index
    %c0_0 = arith.constant 0 : index
    %0 = vector.load %arg1[%c0, %c0_0] : memref<128x128xf32, #tpu.memory_space<vmem>>, vector<128x128xf32>
    %c0_1 = arith.constant 0 : index
    %c0_2 = arith.constant 0 : index
    %1 = vector.load %arg2[%c0_1, %c0_2] : memref<128x128xf32, #tpu.memory_space<vmem>>, vector<128x128xf32>
    %cst = arith.constant dense<0.000000e+00> : vector<128x128xf32>
    %2 = tpu.matmul %0, %1, %cst {dimension_numbers = #tpu.dot_dimension_numbers<[1], [0], [0], [1], [0, 0, 1, 1], [], []>} : vector<128x128xf32>, vector<128x128xf32>, vector<128x128xf32> -> vector<128x128xf32>
    %c0_3 = arith.constant 0 : index
    %c0_4 = arith.constant 0 : index
    %3 = vector.load %arg5[%c0_3, %c0_4] : memref<128x128xf32, #tpu.memory_space<vmem>>, vector<128x128xf32>
    tpu.vector_store %arg5[%c0_3, %c0_4], %2 {strides = array<i32>} : memref<128x128xf32, #tpu.memory_space<vmem>>, vector<128x128xf32>,
    %c0_i32 = arith.constant 0 : i32
    %4 = arith.cmpi eq, %arg0, %c0_i32 : i32
    %5 = arith.extui %4 : i1 to i32
    %c0_i32_5 = arith.constant 0 : i32
    %6 = arith.cmpi ne, %5, %c0_i32_5 : i32
    scf.if %6 {
      %cst_17 = arith.constant 0.000000e+00 : f32
      %21 = vector.broadcast %cst_17 : f32 to vector<1x128xf32>
      %c0_18 = arith.constant 0 : index
      %c0_19 = arith.constant 0 : index
      %22 = vector.load %arg6[%c0_18, %c0_19] : memref<1x128xf32, #tpu.memory_space<vmem>>, vector<1x128xf32>
      tpu.vector_store %arg6[%c0_18, %c0_19], %21 {strides = array<i32>} : memref<1x128xf32, #tpu.memory_space<vmem>>, vector<1x128xf32>,
      %cst_20 = arith.constant 0.000000e+00 : f32
      %23 = vector.broadcast %cst_20 : f32 to vector<1x128xf32>
      %c0_21 = arith.constant 0 : index
      %c0_22 = arith.constant 0 : index
      %24 = vector.load %arg7[%c0_21, %c0_22] : memref<1x128xf32, #tpu.memory_space<vmem>>, vector<1x128xf32>
      tpu.vector_store %arg7[%c0_21, %c0_22], %23 {strides = array<i32>} : memref<1x128xf32, #tpu.memory_space<vmem>>, vector<1x128xf32>,
    } else {
    }
    %c0_6 = arith.constant 0 : index
    %c0_7 = arith.constant 0 : index
    %7 = vector.load %arg6[%c0_6, %c0_7] : memref<1x128xf32, #tpu.memory_space<vmem>>, vector<1x128xf32>
    %cst_8 = arith.constant dense<0.000000e+00> : vector<128xf32>
    %8 = vector.multi_reduction <add>, %2, %cst_8 [0] : vector<128x128xf32> to vector<128xf32>
    %9 = vector.shape_cast %8 : vector<128xf32> to vector<1x128xf32>
    %10 = arith.addf %7, %9 : vector<1x128xf32>
    %c0_9 = arith.constant 0 : index
    %c0_10 = arith.constant 0 : index
    %11 = vector.load %arg6[%c0_9, %c0_10] : memref<1x128xf32, #tpu.memory_space<vmem>>, vector<1x128xf32>
    tpu.vector_store %arg6[%c0_9, %c0_10], %10 {strides = array<i32>} : memref<1x128xf32, #tpu.memory_space<vmem>>, vector<1x128xf32>,
    %c0_11 = arith.constant 0 : index
    %c0_12 = arith.constant 0 : index
    %12 = vector.load %arg7[%c0_11, %c0_12] : memref<1x128xf32, #tpu.memory_space<vmem>>, vector<1x128xf32>
    %13 = arith.mulf %2, %2 : vector<128x128xf32>
    %cst_13 = arith.constant dense<0.000000e+00> : vector<128xf32>
    %14 = vector.multi_reduction <add>, %13, %cst_13 [0] : vector<128x128xf32> to vector<128xf32>
    %15 = vector.shape_cast %14 : vector<128xf32> to vector<1x128xf32>
    %16 = arith.addf %12, %15 : vector<1x128xf32>
    %c0_14 = arith.constant 0 : index
    %c0_15 = arith.constant 0 : index
    %17 = vector.load %arg7[%c0_14, %c0_15] : memref<1x128xf32, #tpu.memory_space<vmem>>, vector<1x128xf32>
    tpu.vector_store %arg7[%c0_14, %c0_15], %16 {strides = array<i32>} : memref<1x128xf32, #tpu.memory_space<vmem>>, vector<1x128xf32>,
    %c3_i32 = arith.constant 3 : i32
    %18 = arith.cmpi eq, %arg0, %c3_i32 : i32
    %19 = arith.extui %18 : i1 to i32
    %c0_i32_16 = arith.constant 0 : i32
    %20 = arith.cmpi ne, %19, %c0_i32_16 : i32
    scf.if %20 {
      %c0_17 = arith.constant 0 : index
      %c0_18 = arith.constant 0 : index
      %21 = vector.load %arg6[%c0_17, %c0_18] : memref<1x128xf32, #tpu.memory_space<vmem>>, vector<1x128xf32>
      %cst_19 = arith.constant 0.001953125 : f32
      %22 = vector.broadcast %cst_19 : f32 to vector<1x128xf32>
      %23 = arith.mulf %21, %22 : vector<1x128xf32>
      %c0_20 = arith.constant 0 : index
      %c0_21 = arith.constant 0 : index
      %24 = vector.load %arg7[%c0_20, %c0_21] : memref<1x128xf32, #tpu.memory_space<vmem>>, vector<1x128xf32>
      %cst_22 = arith.constant 0.001953125 : f32
      %25 = vector.broadcast %cst_22 : f32 to vector<1x128xf32>
      %26 = arith.mulf %24, %25 : vector<1x128xf32>
      %27 = arith.mulf %23, %23 : vector<1x128xf32>
      %28 = arith.subf %26, %27 : vector<1x128xf32>
      %cst_23 = arith.constant 0.000000e+00 : f32
      %29 = vector.broadcast %cst_23 : f32 to vector<1x128xf32>
      %30 = arith.maximumf %28, %29 : vector<1x128xf32>
      %cst_24 = arith.constant 9.99999974E-6 : f32
      %31 = vector.broadcast %cst_24 : f32 to vector<1x128xf32>
      %32 = arith.addf %30, %31 : vector<1x128xf32>
      %33 = math.rsqrt %32 : vector<1x128xf32>
      %c0_25 = arith.constant 0 : index
      %c0_26 = arith.constant 0 : index
      %34 = vector.load %arg3[%c0_25, %c0_26] : memref<1x128xf32, #tpu.memory_space<vmem>>, vector<1x128xf32>
      %35 = arith.mulf %34, %33 : vector<1x128xf32>
      %c0_27 = arith.constant 0 : index
      %c0_28 = arith.constant 0 : index
      %36 = vector.load %arg4[%c0_27, %c0_28] : memref<1x128xf32, #tpu.memory_space<vmem>>, vector<1x128xf32>
      %37 = arith.mulf %23, %35 : vector<1x128xf32>
      %38 = arith.subf %36, %37 : vector<1x128xf32>
      %c0_29 = arith.constant 0 : index
      %c0_30 = arith.constant 0 : index
      %39 = vector.load %arg6[%c0_29, %c0_30] : memref<1x128xf32, #tpu.memory_space<vmem>>, vector<1x128xf32>
      tpu.vector_store %arg6[%c0_29, %c0_30], %35 {strides = array<i32>} : memref<1x128xf32, #tpu.memory_space<vmem>>, vector<1x128xf32>,
      %c0_31 = arith.constant 0 : index
      %c0_32 = arith.constant 0 : index
      %40 = vector.load %arg7[%c0_31, %c0_32] : memref<1x128xf32, #tpu.memory_space<vmem>>, vector<1x128xf32>
      tpu.vector_store %arg7[%c0_31, %c0_32], %38 {strides = array<i32>} : memref<1x128xf32, #tpu.memory_space<vmem>>, vector<1x128xf32>,
    } else {
    }
    return
  }
  func.func @transform_0(%arg0: i32) -> (i32, i32) {
    %c0_i32 = arith.constant 0 : i32
    %c0_i32_0 = arith.constant 0 : i32
    return %arg0, %c0_i32 : i32, i32
  }
  func.func @transform_1(%arg0: i32) -> (i32, i32) {
    %c0_i32 = arith.constant 0 : i32
    %c0_i32_0 = arith.constant 0 : i32
    %c0_i32_1 = arith.constant 0 : i32
    return %c0_i32, %c0_i32_0 : i32, i32
  }
  func.func @transform_2(%arg0: i32) -> (i32, i32) {
    %c0_i32 = arith.constant 0 : i32
    %c0_i32_0 = arith.constant 0 : i32
    %c0_i32_1 = arith.constant 0 : i32
    return %c0_i32, %c0_i32_0 : i32, i32
  }
  func.func @transform_3(%arg0: i32) -> (i32, i32) {
    %c0_i32 = arith.constant 0 : i32
    %c0_i32_0 = arith.constant 0 : i32
    %c0_i32_1 = arith.constant 0 : i32
    return %c0_i32, %c0_i32_0 : i32, i32
  }
  func.func @transform_4(%arg0: i32) -> (i32, i32) {
    %c0_i32 = arith.constant 0 : i32
    %c0_i32_0 = arith.constant 0 : i32
    return %arg0, %c0_i32 : i32, i32
  }
  func.func @transform_5(%arg0: i32) -> (i32, i32) {
    %c0_i32 = arith.constant 0 : i32
    %c0_i32_0 = arith.constant 0 : i32
    %c0_i32_1 = arith.constant 0 : i32
    return %c0_i32, %c0_i32_0 : i32, i32
  }
  func.func @transform_6(%arg0: i32) -> (i32, i32) {
    %c0_i32 = arith.constant 0 : i32
    %c0_i32_0 = arith.constant 0 : i32
    %c0_i32_1 = arith.constant 0 : i32
    return %c0_i32, %c0_i32_0 : i32, i32
  }
}

module attributes {stable_mosaic.version = 11 : i64} {
  func.func @_bn_relu_kernel(%arg0: i32, %arg1: memref<128x128xf32, #tpu.memory_space<vmem>>, %arg2: memref<1x128xf32, #tpu.memory_space<vmem>>, %arg3: memref<1x128xf32, #tpu.memory_space<vmem>>, %arg4: memref<128x128xf32, #tpu.memory_space<vmem>>) attributes {dimension_semantics = [#tpu.dimension_semantics<parallel>], iteration_bounds = array<i64: 4>, scalar_prefetch = 0 : i64, scratch_operands = 0 : i64, tpu.core_type = #tpu.core_type<tc>, window_params = [{transform_indices = @transform_0, window_bounds = array<i64: 128, 128>}, {pipeline_mode = #tpu.pipeline_mode<synchronous>, transform_indices = @transform_1, window_bounds = array<i64: 1, 128>}, {pipeline_mode = #tpu.pipeline_mode<synchronous>, transform_indices = @transform_2, window_bounds = array<i64: 1, 128>}, {transform_indices = @transform_3, window_bounds = array<i64: 128, 128>}]} {
    %c0 = arith.constant 0 : index
    %c0_0 = arith.constant 0 : index
    %0 = vector.load %arg1[%c0, %c0_0] : memref<128x128xf32, #tpu.memory_space<vmem>>, vector<128x128xf32>
    %c0_1 = arith.constant 0 : index
    %c0_2 = arith.constant 0 : index
    %1 = vector.load %arg2[%c0_1, %c0_2] : memref<1x128xf32, #tpu.memory_space<vmem>>, vector<1x128xf32>
    %2 = vector.broadcast %1 : vector<1x128xf32> to vector<128x128xf32>
    %3 = arith.mulf %0, %2 : vector<128x128xf32>
    %c0_3 = arith.constant 0 : index
    %c0_4 = arith.constant 0 : index
    %4 = vector.load %arg3[%c0_3, %c0_4] : memref<1x128xf32, #tpu.memory_space<vmem>>, vector<1x128xf32>
    %5 = vector.broadcast %4 : vector<1x128xf32> to vector<128x128xf32>
    %6 = arith.addf %3, %5 : vector<128x128xf32>
    %cst = arith.constant 0.000000e+00 : f32
    %7 = vector.broadcast %cst : f32 to vector<128x128xf32>
    %8 = arith.maximumf %6, %7 : vector<128x128xf32>
    %c0_5 = arith.constant 0 : index
    %c0_6 = arith.constant 0 : index
    %9 = vector.load %arg4[%c0_5, %c0_6] : memref<128x128xf32, #tpu.memory_space<vmem>>, vector<128x128xf32>
    tpu.vector_store %arg4[%c0_5, %c0_6], %8 {strides = array<i32>} : memref<128x128xf32, #tpu.memory_space<vmem>>, vector<128x128xf32>,
    return
  }
  func.func @transform_0(%arg0: i32) -> (i32, i32) {
    %c0_i32 = arith.constant 0 : i32
    %c0_i32_0 = arith.constant 0 : i32
    return %arg0, %c0_i32 : i32, i32
  }
  func.func @transform_1(%arg0: i32) -> (i32, i32) {
    %c0_i32 = arith.constant 0 : i32
    %c0_i32_0 = arith.constant 0 : i32
    %c0_i32_1 = arith.constant 0 : i32
    return %c0_i32, %c0_i32_0 : i32, i32
  }
  func.func @transform_2(%arg0: i32) -> (i32, i32) {
    %c0_i32 = arith.constant 0 : i32
    %c0_i32_0 = arith.constant 0 : i32
    %c0_i32_1 = arith.constant 0 : i32
    return %c0_i32, %c0_i32_0 : i32, i32
  }
  func.func @transform_3(%arg0: i32) -> (i32, i32) {
    %c0_i32 = arith.constant 0 : i32
    %c0_i32_0 = arith.constant 0 : i32
    return %arg0, %c0_i32 : i32, i32
  }
}

</mosaic_0001>

<bundles_post_ra>
// kernel: basic_cnn_layer_forward.3
= control target key start
LH: loop header
LB: loop body
LE: loop exit
PB: predicated region body
PF: predicated region fallthrough
CT: control target
= control target key end

     0   :  { %s373_s12 = smov 0   ;;  %s439_s0 = inlined_call_operand.vmem [shape: f32[512,128], index: 0, kind: input, shape index: {}, may-alias: {0,3}]   ;;  %s440_s1 = inlined_call_operand.vmem [shape: f32[1,128], index: 1, kind: input, shape index: {}]   ;;  %s441_s2 = inlined_call_operand.vmem [shape: f32[1,128], index: 2, kind: input, shape index: {}]   ;;  %s442_s3 = inlined_call_operand.vmem [shape: f32[512,128], index: 3, kind: output, shape index: {}, may-alias: {0,3}]  }
   0x1 LB: > { %s324_s13 = sadd.s32 4294967295, %s351_s12   ;;  %p328_p0 = scmp.ge.s32.totalorder %s351_s12, 1  ;;  %s351_s12 = sphi %s373_s12, %s13_s12  }
   0x2   : > { %p138_p1 = scmp.lt.s32.totalorder %s351_s12, 5 }
   0x4   : > { %p139_p2 = pnand %p328_p0, %p138_p1 }
   0x5   : > { %s329_s14 = sshll.u32 (!%p139_p2), %s324_s13, 4  ;;  %v333_v0 = vld [vmem:[%s440_s1] ss:$0 sm:$0xff] (!%p139_p2) }
   0x6   : > { %142 = sbr.rel (%p139_p2) target bundleno = 35 (0x23), region = 32  ;;  %p163_p3 = scmp.lt.s32.totalorder (!%p139_p2), %s329_s14, 63  ;;  %v334_v1 = vld [vmem:[%s441_s2] ss:$0 sm:$0xff] (!%p139_p2) }
   0xd   : > { %s444_s14 = smov (!%p163_p3, %s329_s14), 63 }
   0xe   : > { %s330_s15 = sshll.u32 %s444_s14, 3 }
   0xf   : > { %s392_s20 = scalar_lea.vmem %s439_s0, %s330_s15  ;;  %s418_s25 = scalar_lea.vmem %s442_s3, %s330_s15 }
  0x10   : > { %v174_v2 = vld [vmem:[%s392_s20] sm:$0xff]  ;;  %v175_v3 = vld [vmem:[%s392_s20 + $0x8] sm:$0xff]  ;;  %v176_v4 = vld [vmem:[%s392_s20 + $0x10] sm:$0xff] }
  0x11   : > { %v177_v5 = vld [vmem:[%s392_s20 + $0x18] sm:$0xff]  ;;  %v178_v6 = vld [vmem:[%s392_s20 + $0x20] sm:$0xff]  ;;  %v179_v7 = vld [vmem:[%s392_s20 + $0x28] sm:$0xff]  ;;  %v197_v8 = vmul.f32 %v333_v0, %v174_v2  ;;  %v198_v9 = vmul.f32 %v333_v0, %v175_v3  ;;  %v199_v10 = vmul.f32 %v333_v0, %v176_v4 }
  0x12   : > { %v180_v11 = vld [vmem:[%s392_s20 + $0x30] sm:$0xff]  ;;  %v181_v12 = vld [vmem:[%s392_s20 + $0x38] sm:$0xff]  ;;  %v182_v13 = vld [vmem:[%s392_s20 + $0x40] sm:$0xff]  ;;  %v200_v14 = vmul.f32 %v333_v0, %v177_v5  ;;  %v201_v15 = vmul.f32 %v333_v0, %v178_v6  ;;  %v202_v16 = vmul.f32 %v333_v0, %v179_v7 }
  0x13   : > { %v183_v17 = vld [vmem:[%s392_s20 + $0x48] sm:$0xff]  ;;  %v184_v18 = vld [vmem:[%s392_s20 + $0x50] sm:$0xff]  ;;  %v185_v19 = vld [vmem:[%s392_s20 + $0x58] sm:$0xff]  ;;  %v203_v20 = vmul.f32 %v333_v0, %v180_v11  ;;  %v204_v21 = vmul.f32 %v333_v0, %v181_v12  ;;  %v205_v22 = vmul.f32 %v333_v0, %v182_v13  ;;  %v220_v23 = vadd.f32 %v334_v1, %v197_v8 }
  0x14   : > { %v186_v24 = vld [vmem:[%s392_s20 + $0x60] sm:$0xff]  ;;  %v187_v25 = vld [vmem:[%s392_s20 + $0x68] sm:$0xff]  ;;  %v188_v26 = vld [vmem:[%s392_s20 + $0x70] sm:$0xff]  ;;  %v206_v27 = vmul.f32 %v333_v0, %v183_v17  ;;  %v207_v28 = vmul.f32 %v333_v0, %v184_v18  ;;  %v208_v29 = vmul.f32 %v333_v0, %v185_v19  ;;  %v221_v30 = vadd.f32 %v334_v1, %v198_v9 }
  0x15   : > { %v189_v31 = vld [vmem:[%s392_s20 + $0x78] sm:$0xff]  ;;  %v209_v32 = vmul.f32 %v333_v0, %v186_v24  ;;  %v210_v33 = vmul.f32 %v333_v0, %v187_v25  ;;  %v211_v34 = vmul.f32 %v333_v0, %v188_v26  ;;  %v222_v35 = vadd.f32 %v334_v1, %v199_v10 }
  0x16   : > { %v212_v36 = vmul.f32 %v333_v0, %v189_v31  ;;  %v223_v37 = vadd.f32 %v334_v1, %v200_v14  ;;  %v224_v38 = vadd.f32 %v334_v1, %v201_v15  ;;  %v225_v39 = vadd.f32 %v334_v1, %v202_v16 }
  0x17   : > { %v226_v40 = vadd.f32 %v334_v1, %v203_v20  ;;  %v227_v41 = vadd.f32 %v334_v1, %v204_v21  ;;  %v228_v42 = vadd.f32 %v334_v1, %v205_v22  ;;  %v229_v43 = vadd.f32 %v334_v1, %v206_v27 }
  0x18   : > { %v230_v44 = vadd.f32 %v334_v1, %v207_v28  ;;  %v231_v45 = vadd.f32 %v334_v1, %v208_v29  ;;  %v232_v46 = vadd.f32 %v334_v1, %v209_v32  ;;  %v233_v47 = vadd.f32 %v334_v1, %v210_v33 }
  0x19   : > { %v234_v48 = vadd.f32 %v334_v1, %v211_v34  ;;  %v235_v49 = vadd.f32 %v334_v1, %v212_v36  ;;  %v236_v50 = vmax.f32 %v220_v23, 0.0  ;;  %v237_v51 = vmax.f32 %v221_v30, 0.0 }
  0x1a   : > { %v238_v52 = vmax.f32 %v222_v35, 0.0  ;;  %v239_v53 = vmax.f32 %v223_v37, 0.0  ;;  %v240_v54 = vmax.f32 %v224_v38, 0.0  ;;  %v241_v55 = vmax.f32 %v225_v39, 0.0 }
  0x1b   : > { %v242_v56 = vmax.f32 %v226_v40, 0.0  ;;  %v243_v57 = vmax.f32 %v227_v41, 0.0  ;;  %v244_v58 = vmax.f32 %v228_v42, 0.0  ;;  %v245_v59 = vmax.f32 %v229_v43, 0.0  ;;  %252 = vst [vmem:[%s418_s25] sm:$0xff] %v236_v50  ;;  %253 = vst [vmem:[%s418_s25 + $0x8] sm:$0xff] %v237_v51 }
  0x1c   : > { %v246_v60 = vmax.f32 %v230_v44, 0.0  ;;  %v247_v61 = vmax.f32 %v231_v45, 0.0  ;;  %v248_v62 = vmax.f32 %v232_v46, 0.0  ;;  %v249_v63 = vmax.f32 %v233_v47, 0.0  ;;  %254 = vst [vmem:[%s418_s25 + $0x10] sm:$0xff] %v238_v52  ;;  %255 = vst [vmem:[%s418_s25 + $0x18] sm:$0xff] %v239_v53 }
  0x1d   : > { %256 = vst [vmem:[%s418_s25 + $0x20] sm:$0xff] %v240_v54  ;;  %257 = vst [vmem:[%s418_s25 + $0x28] sm:$0xff] %v241_v55  ;;  %v250_v0 = vmax.f32 %v234_v48, 0.0  ;;  %v251_v1 = vmax.f32 %v235_v49, 0.0 }
  0x1e   : > { %258 = vst [vmem:[%s418_s25 + $0x30] sm:$0xff] %v242_v56  ;;  %259 = vst [vmem:[%s418_s25 + $0x38] sm:$0xff] %v243_v57 }
  0x1f   : > { %260 = vst [vmem:[%s418_s25 + $0x40] sm:$0xff] %v244_v58  ;;  %261 = vst [vmem:[%s418_s25 + $0x48] sm:$0xff] %v245_v59 }
  0x20   : > { %262 = vst [vmem:[%s418_s25 + $0x50] sm:$0xff] %v246_v60  ;;  %263 = vst [vmem:[%s418_s25 + $0x58] sm:$0xff] %v247_v61 }
  0x21   : > { %264 = vst [vmem:[%s418_s25 + $0x60] sm:$0xff] %v248_v62  ;;  %265 = vst [vmem:[%s418_s25 + $0x68] sm:$0xff] %v249_v63 }
  0x22   : > { %266 = vst [vmem:[%s418_s25 + $0x70] sm:$0xff] %v250_v0  ;;  %267 = vst [vmem:[%s418_s25 + $0x78] sm:$0xff] %v251_v1 }
  0x23 PF: > { %s13_s12 = sadd.s32 1, %s351_s12  }
  0x24   : > { %p10_p4 = scmp.ge.s32.totalorder %s13_s12, 6  }
  0x26   :  { %12 = sbr.rel (!%p10_p4) target bundleno = 1 (0x1), region = 62 }

// kernel: basic_cnn_layer_forward.2
= control target key start
LH: loop header
LB: loop body
LE: loop exit
PB: predicated region body
PF: predicated region fallthrough
CT: control target
= control target key end

     0   :  { %s805_s21 = smov 0   ;;  %s954_s0 = inlined_call_operand.vmem [shape: f32[512,128], index: 0, kind: input, shape index: {}]   ;;  %s955_s1 = inlined_call_operand.vmem [shape: f32[128,128], index: 1, kind: input, shape index: {}]   ;;  %s956_s2 = inlined_call_operand.vmem [shape: f32[1,128], index: 2, kind: input, shape index: {}]   ;;  %s957_s3 = inlined_call_operand.vmem [shape: f32[1,128], index: 3, kind: input, shape index: {}]   ;;  %s958_s4 = inlined_call_operand.vmem [shape: f32[512,128], index: 4, kind: output, shape index: {0}]   ;;  %s959_s5 = inlined_call_operand.vmem [shape: f32[1,128], index: 5, kind: output, shape index: {1}]   ;;  %s960_s6 = inlined_call_operand.vmem [shape: f32[1,128], index: 6, kind: output, shape index: {2}]  }
   0x1 LB: > { %s811_s22 = sadd.s32 4294967295, %s767_s21   ;;  %p605_p0 = scmp.ge.s32.totalorder %s767_s21, 1  ;;  %s767_s21 = sphi %s805_s21, %s17_s21  }
   0x2   : > { %p208_p1 = scmp.lt.s32.totalorder %s767_s21, 5 }
   0x4   : > { %p209_p2 = pnand %p605_p0, %p208_p1 }
   0x5   : > { %v266_v0 = vld [vmem:[%s955_s1] sm:$0xff] (!%p209_p2)  ;;  %v267_v1 = vld [vmem:[%s955_s1 + $0x8] sm:$0xff] (!%p209_p2)  ;;  %v268_v2 = vld [vmem:[%s955_s1 + $0x10] sm:$0xff] (!%p209_p2)  ;;  %s606_s29 = sshll.u32 (!%p209_p2), %s811_s22, 4  ;;  %p610_p4 = scmp.ne.s32.totalorder (!%p209_p2), %s811_s22, 0 }
   0x6   : > { %212 = sbr.rel (%p209_p2) target bundleno = 347 (0x15b), region = 36  ;;  %v702_v3 = vpack.c.bf16 (!%p209_p2), %v267_v1, %v266_v0  ;;  %v269_v4 = vld [vmem:[%s955_s1 + $0x18] sm:$0xff] (!%p209_p2)  ;;  %p239_p3 = scmp.lt.s32.totalorder (!%p209_p2), %s606_s29, 63  ;;  %v270_v6 = vld [vmem:[%s955_s1 + $0x20] sm:$0xff] (!%p209_p2)  ;;  %v271_v7 = vld [vmem:[%s955_s1 + $0x28] sm:$0xff] (!%p209_p2) }
   0x7   : > { %v706_v5 = vpack.c.bf16 (!%p209_p2), %v269_v4, %v268_v2  ;;  %v710_v8 = vpack.c.bf16 (!%p209_p2), %v271_v7, %v270_v6  ;;  %v272_v9 = vld [vmem:[%s955_s1 + $0x30] sm:$0xff] (!%p209_p2)  ;;  %v273_v10 = vld [vmem:[%s955_s1 + $0x38] sm:$0xff] (!%p209_p2)  ;;  %v274_v14 = vld [vmem:[%s955_s1 + $0x40] sm:$0xff] (!%p209_p2) }
   0x8   : > { %703 = vmatprep.subr.bf16.mxu0 (!%p209_p2), %v702_v3  ;;  %734 = vmatprep.subr.bf16.mxu1 (!%p209_p2), %v702_v3  ;;  %v714_v13 = vpack.c.bf16 (!%p209_p2), %v273_v10, %v272_v9  ;;  %v275_v15 = vld [vmem:[%s955_s1 + $0x48] sm:$0xff] (!%p209_p2)  ;;  %v276_v17 = vld [vmem:[%s955_s1 + $0x50] sm:$0xff] (!%p209_p2)  ;;  %v277_v18 = vld [vmem:[%s955_s1 + $0x58] sm:$0xff] (!%p209_p2) }
   0x9   : > { %705 = vmatpush3.bf16.msra.mxu0 (!%p209_p2), %v702_v3  ;;  %742 = vmatpush3.bf16.msra.mxu1 (!%p209_p2), %v702_v3  ;;  %v718_v16 = vpack.c.bf16 (!%p209_p2), %v275_v15, %v274_v14  ;;  %v722_v19 = vpack.c.bf16 (!%p209_p2), %v277_v18, %v276_v17  ;;  %v278_v20 = vld [vmem:[%s955_s1 + $0x60] sm:$0xff] (!%p209_p2)  ;;  %v279_v21 = vld [vmem:[%s955_s1 + $0x68] sm:$0xff] (!%p209_p2)  ;;  %v280_v23 = vld [vmem:[%s955_s1 + $0x70] sm:$0xff] (!%p209_p2) }
   0xa   : > { %707 = vmatprep.subr.bf16.mxu0 (!%p209_p2), %v706_v5  ;;  %735 = vmatprep.subr.bf16.mxu1 (!%p209_p2), %v706_v5  ;;  %v726_v22 = vpack.c.bf16 (!%p209_p2), %v279_v21, %v278_v20  ;;  %v281_v24 = vld [vmem:[%s955_s1 + $0x78] sm:$0xff] (!%p209_p2) }
   0xb   : > { %v730_v25 = vpack.c.bf16 (!%p209_p2), %v281_v24, %v280_v23 }
   0xd   : > { %s962_s29 = smov (!%p239_p3, %s606_s29), 63  ;;  %709 = vmatpush3.bf16.msra.mxu0 %v706_v5  ;;  %743 = vmatpush3.bf16.msra.mxu1 %v706_v5  ;;  %v769_v56 = vmov (!%p610_p4), 0.0  }
   0xe   : > { %s607_s12 = sshll.u32 %s962_s29, 3  ;;  %711 = vmatprep.subr.bf16.mxu0 %v710_v8  ;;  %736 = vmatprep.subr.bf16.mxu1 %v710_v8  ;;  %447 = vst [vmem:[%s959_s5] sm:$0x1] (!%p610_p4), %v769_v56  ;;  %448 = vst [vmem:[%s960_s6] sm:$0x1] (!%p610_p4), %v769_v56 }
   0xf   : > { %s848_s19 = scalar_lea.vmem %s954_s0, %s607_s12  ;;  %s895_s18 = scalar_lea.vmem %s958_s4, %s607_s12 }
  0x10   : > { %v250_v11 = vld [vmem:[%s848_s19] sm:$0xff]  ;;  %v251_v26 = vld [vmem:[%s848_s19 + $0x8] sm:$0xff]  ;;  %v252_v28 = vld [vmem:[%s848_s19 + $0x10] sm:$0xff] }
  0x11   : > { %v258_v12 = vld [vmem:[%s848_s19 + $0x40] sm:$0xff]  ;;  %678 = vmatprep.mubr.f32.mxu0 %v250_v11  ;;  %713 = vmatpush3.bf16.msra.mxu0 %v710_v8  ;;  %v259_v27 = vld [vmem:[%s848_s19 + $0x48] sm:$0xff]  ;;  %v260_v29 = vld [vmem:[%s848_s19 + $0x50] sm:$0xff] }
  0x12   : > { %690 = vmatprep.mubr.f32.mxu1 %v258_v12  ;;  %744 = vmatpush3.bf16.msra.mxu1 %v710_v8  ;;  %v253_v30 = vld [vmem:[%s848_s19 + $0x18] sm:$0xff]  ;;  %v254_v32 = vld [vmem:[%s848_s19 + $0x20] sm:$0xff]  ;;  %v255_v34 = vld [vmem:[%s848_s19 + $0x28] sm:$0xff] }
  0x13   : > { %715 = vmatprep.subr.bf16.mxu0 %v714_v13  ;;  %737 = vmatprep.subr.bf16.mxu1 %v714_v13  ;;  %v261_v31 = vld [vmem:[%s848_s19 + $0x58] sm:$0xff]  ;;  %v262_v33 = vld [vmem:[%s848_s19 + $0x60] sm:$0xff]  ;;  %v263_v35 = vld [vmem:[%s848_s19 + $0x68] sm:$0xff] }
  0x14   : > { %v256_v36 = vld [vmem:[%s848_s19 + $0x30] sm:$0xff]  ;;  %v257_v38 = vld [vmem:[%s848_s19 + $0x38] sm:$0xff] }
  0x15   : > { %717 = vmatpush3.bf16.msra.mxu0 %v714_v13  ;;  %v264_v37 = vld [vmem:[%s848_s19 + $0x70] sm:$0xff]  ;;  %v265_v39 = vld [vmem:[%s848_s19 + $0x78] sm:$0xff] }
  0x16   : > { %745 = vmatpush3.bf16.msra.mxu1 %v714_v13  ;;  %719 = vmatprep.subr.bf16.mxu0 %v718_v16 }
  0x17   : > { %738 = vmatprep.subr.bf16.mxu1 %v718_v16 }
  0x19   : > { %721 = vmatpush3.bf16.msra.mxu0 %v718_v16 }
  0x1a   : > { %746 = vmatpush3.bf16.msra.mxu1 %v718_v16  ;;  %723 = vmatprep.subr.bf16.mxu0 %v722_v19 }
  0x1b   : > { %739 = vmatprep.subr.bf16.mxu1 %v722_v19 }
  0x1d   : > { %725 = vmatpush3.bf16.msra.mxu0 %v722_v19 }
  0x1e   : > { %747 = vmatpush3.bf16.msra.mxu1 %v722_v19  ;;  %727 = vmatprep.subr.bf16.mxu0 %v726_v22 }
  0x1f   : > { %740 = vmatprep.subr.bf16.mxu1 %v726_v22 }
  0x21   : > { %729 = vmatpush3.bf16.msra.mxu0 %v726_v22 }
  0x22   : > { %748 = vmatpush3.bf16.msra.mxu1 %v726_v22  ;;  %731 = vmatprep.subr.bf16.mxu0 %v730_v25 }
  0x23   : > { %741 = vmatprep.subr.bf16.mxu1 %v730_v25 }
  0x25   : > { %733 = vmatpush3.bf16.msra.mxu0 %v730_v25 }
  0x26   : > { %749 = vmatpush3.bf16.msra.mxu1 %v730_v25 }
  0x28   : > { %679 = vmatmul.mubr.f32.vlgmr.msra.gmra.mrb[0].mxu0 %v251_v26 }
  0x29   : > { %691 = vmatmul.mubr.f32.vlgmr.msra.gmra.mrb[0].mxu1 %v259_v27  ;;  %681 = vmatprep.mubr.f32.mxu0 %v252_v28 }
  0x2a   : > { %693 = vmatprep.mubr.f32.mxu1 %v260_v29 }
  0x2c   : > { %682 = vmatmul.mubr.f32.gmra.mrb[2].mxu0 %v253_v30 }
  0x2d   : > { %694 = vmatmul.mubr.f32.gmra.mrb[2].mxu1 %v261_v31  ;;  %684 = vmatprep.mubr.f32.mxu0 %v254_v32 }
  0x2e   : > { %696 = vmatprep.mubr.f32.mxu1 %v262_v33 }
  0x30   : > { %685 = vmatmul.mubr.f32.gmra.mrb[4].mxu0 %v255_v34 }
  0x31   : > { %697 = vmatmul.mubr.f32.gmra.mrb[4].mxu1 %v263_v35  ;;  %687 = vmatprep.mubr.f32.mxu0 %v256_v36 }
  0x32   : > { %699 = vmatprep.mubr.f32.mxu1 %v264_v37 }
  0x34   : > { %688 = vmatmul.mubr.f32.gmra.mrb[6].mxu0 %v257_v38 }
  0x35   : > { %700 = vmatmul.mubr.f32.gmra.mrb[6].mxu1 %v265_v39 }
  0xfb   : > { %v680_v40 = vpop.f32.mrb[0].mxu0 }
  0xfc   : > { %v692_v41 = vpop.f32.mrb[0].mxu1  ;;  %428 = vst [vmem:[%s895_s18 + $0x8] sm:$0xff] %v680_v40  ;;  %v348_v42 = vpop.f32.mrb[1].mxu0 }
  0xfd   : > { %436 = vst [vmem:[%s895_s18 + $0x48] sm:$0xff] %v692_v41  ;;  %v388_v43 = vpop.f32.mrb[1].mxu1  ;;  %427 = vst [vmem:[%s895_s18] sm:$0xff] %v348_v42 }
  0xfe   : > { %435 = vst [vmem:[%s895_s18 + $0x40] sm:$0xff] %v388_v43 }
  0xff   : > { %v683_v44 = vpop.f32.mrb[2].mxu0 }
 0x100   : > { %v695_v45 = vpop.f32.mrb[2].mxu1  ;;  %430 = vst [vmem:[%s895_s18 + $0x18] sm:$0xff] %v683_v44  ;;  %v358_v46 = vpop.f32.mrb[3].mxu0 }
 0x101   : > { %438 = vst [vmem:[%s895_s18 + $0x58] sm:$0xff] %v695_v45  ;;  %v398_v47 = vpop.f32.mrb[3].mxu1  ;;  %429 = vst [vmem:[%s895_s18 + $0x10] sm:$0xff] %v358_v46 }
 0x102   : > { %437 = vst [vmem:[%s895_s18 + $0x50] sm:$0xff] %v398_v47 }
 0x103   : > { %v686_v48 = vpop.f32.mrb[4].mxu0 }
 0x104   : > { %v698_v49 = vpop.f32.mrb[4].mxu1  ;;  %432 = vst [vmem:[%s895_s18 + $0x28] sm:$0xff] %v686_v48  ;;  %v368_v50 = vpop.f32.mrb[5].mxu0  ;;  %446 = sbr.rel (%p610_p4) target bundleno = 267 (0x10b), region = 40 }
 0x105   : > { %440 = vst [vmem:[%s895_s18 + $0x68] sm:$0xff] %v698_v49  ;;  %v408_v51 = vpop.f32.mrb[5].mxu1  ;;  %431 = vst [vmem:[%s895_s18 + $0x20] sm:$0xff] %v368_v50 }
 0x106   : > { %439 = vst [vmem:[%s895_s18 + $0x60] sm:$0xff] %v408_v51 }
 0x107   : > { %v689_v52 = vpop.f32.mrb[6].mxu0 }
 0x108   : > { %v701_v53 = vpop.f32.mrb[6].mxu1  ;;  %434 = vst [vmem:[%s895_s18 + $0x38] sm:$0xff] %v689_v52  ;;  %v378_v54 = vpop.f32.mrb[7].mxu0 }
 0x109   : > { %442 = vst [vmem:[%s895_s18 + $0x78] sm:$0xff] %v701_v53  ;;  %v418_v55 = vpop.f32.mrb[7].mxu1  ;;  %433 = vst [vmem:[%s895_s18 + $0x30] sm:$0xff] %v378_v54 }
 0x10a   : > { %441 = vst [vmem:[%s895_s18 + $0x70] sm:$0xff] %v418_v55 }
 0x10b PF: > { %v450_v57 = vadd.f32 %v680_v40, %v348_v42  ;;  %v474_v58 = vmul.f32 %v348_v42, %v348_v42  ;;  %v475_v59 = vmul.f32 %v680_v40, %v680_v40  ;;  %v476_v61 = vmul.f32 %v358_v46, %v358_v46  ;;  %p611_p5 = scmp.ne.s32.totalorder %s811_s22, 3 }
 0x10c   : > { %v477_v63 = vmul.f32 %v683_v44, %v683_v44  ;;  %v478_v2 = vmul.f32 %v368_v50, %v368_v50  ;;  %v479_v5 = vmul.f32 %v686_v48, %v686_v48  ;;  %v480_v8 = vmul.f32 %v378_v54, %v378_v54 }
 0x10d   : > { %v451_v60 = vadd.f32 %v450_v57, %v358_v46  ;;  %v490_v0 = vadd.f32 %v475_v59, %v474_v58  ;;  %v481_v11 = vmul.f32 %v689_v52, %v689_v52  ;;  %v482_v14 = vmul.f32 %v388_v43, %v388_v43 }
 0x10e   : > { %v483_v17 = vmul.f32 %v692_v41, %v692_v41  ;;  %v484_v20 = vmul.f32 %v398_v47, %v398_v47  ;;  %v485_v23 = vmul.f32 %v695_v45, %v695_v45  ;;  %v486_v26 = vmul.f32 %v408_v51, %v408_v51 }
 0x10f   : > { %v452_v62 = vadd.f32 %v683_v44, %v451_v60  ;;  %v491_v3 = vadd.f32 %v490_v0, %v476_v61  ;;  %v487_v29 = vmul.f32 %v698_v49, %v698_v49  ;;  %v488_v32 = vmul.f32 %v418_v55, %v418_v55 }
 0x110   : > { %v489_v35 = vmul.f32 %v701_v53, %v701_v53 }
 0x111   : > { %v453_v1 = vadd.f32 %v452_v62, %v368_v50  ;;  %v492_v6 = vadd.f32 %v491_v3, %v477_v63  ;;  %v526_v63 = vld [vmem:[%s956_s2] sm:$0x1] (!%p611_p5) }
 0x113   : > { %v454_v4 = vadd.f32 %v686_v48, %v453_v1  ;;  %v493_v9 = vadd.f32 %v492_v6, %v478_v2  ;;  %v528_v2 = vld [vmem:[%s957_s3] sm:$0x1] (!%p611_p5) }
 0x115   : > { %v455_v7 = vadd.f32 %v454_v4, %v378_v54  ;;  %v494_v12 = vadd.f32 %v493_v9, %v479_v5 }
 0x117   : > { %v456_v10 = vadd.f32 %v689_v52, %v455_v7  ;;  %v495_v15 = vadd.f32 %v494_v12, %v480_v8  ;;  %v473_v52 = vld [vmem:[%s960_s6] sm:$0x1] }
 0x119   : > { %v457_v13 = vadd.f32 %v456_v10, %v388_v43  ;;  %v496_v18 = vadd.f32 %v495_v15, %v481_v11 }
 0x11b   : > { %v458_v16 = vadd.f32 %v692_v41, %v457_v13  ;;  %v497_v21 = vadd.f32 %v496_v18, %v482_v14 }
 0x11d   : > { %v459_v19 = vadd.f32 %v458_v16, %v398_v47  ;;  %v498_v24 = vadd.f32 %v497_v21, %v483_v17  ;;  %v449_v47 = vld [vmem:[%s959_s5] sm:$0x1] }
 0x11f   : > { %v460_v22 = vadd.f32 %v695_v45, %v459_v19  ;;  %v499_v27 = vadd.f32 %v498_v24, %v484_v20 }
 0x121   : > { %v461_v25 = vadd.f32 %v460_v22, %v408_v51  ;;  %v500_v30 = vadd.f32 %v499_v27, %v485_v23 }
 0x123   : > { %v462_v28 = vadd.f32 %v698_v49, %v461_v25  ;;  %v501_v33 = vadd.f32 %v500_v30, %v486_v26 }
 0x125   : > { %v463_v31 = vadd.f32 %v462_v28, %v418_v55  ;;  %v502_v36 = vadd.f32 %v501_v33, %v487_v29 }
 0x127   : > { %v464_v34 = vadd.f32 %v701_v53, %v463_v31  ;;  %v503_v38 = vadd.f32 %v502_v36, %v488_v32 }
 0x129   : > { %v465_v37 = vrot.slane %v464_v34, 4  ;;  %v504_v40 = vadd.f32 %v503_v38, %v489_v35 }
 0x12b   : > { %v466_v39 = vadd.f32 %v465_v37, %v464_v34  ;;  %v505_v42 = vrot.slane %v504_v40, 4 }
 0x12d   : > { %v467_v41 = vrot.slane %v466_v39, 2  ;;  %v506_v44 = vadd.f32 %v505_v42, %v504_v40 }
 0x12f   : > { %v468_v43 = vadd.f32 %v467_v41, %v466_v39  ;;  %v507_v46 = vrot.slane %v506_v44, 2 }
 0x131   : > { %v469_v45 = vrot.slane %v468_v43, 1  ;;  %v508_v49 = vadd.f32 %v507_v46, %v506_v44 }
 0x133   : > { %v470_v48 = vadd.f32 %v469_v45, %v468_v43  ;;  %v509_v51 = vrot.slane %v508_v49, 1  ;;  %516 = sbr.rel (%p611_p5) target bundleno = 347 (0x15b), region = 44 }
 0x135   : > { %v471_v50 = vadd.f32 %v470_v48, %v449_v47  ;;  %v510_v53 = vadd.f32 %v509_v51, %v508_v49 }
 0x137   : > { %472 = vst [vmem:[%s959_s5] sm:$0x1] %v471_v50  ;;  %v511_v54 = vadd.f32 %v510_v53, %v473_v52 }
 0x139   : > { %512 = vst [vmem:[%s960_s6] sm:$0x1] %v511_v54 }
 0x13e   : > { %v517_v55 = vld [vmem:[%s959_s5] sm:$0x1] }
 0x13f   : > { %v518_v57 = vmul.f32 0.001953125, %v517_v55 }
 0x140   : > { %v519_v56 = vld [vmem:[%s960_s6] sm:$0x1] }
 0x141   : > { %v520_v58 = vmul.f32 0.001953125, %v519_v56  ;;  %v521_v59 = vmul.f32 %v518_v57, %v518_v57 }
 0x143   : > { %v522_v60 = vsub.f32 %v520_v58, %v521_v59 }
 0x145   : > { %v523_v61 = vmax.f32 %v522_v60, 0.0 }
 0x147   : > { %v524_v62 = vadd.f32 1e-05, %v523_v61 }
 0x149   : > { %759 = vrsqrt.f32 %v524_v62 }
 0x153   : > { %v760_v0 = vpop.eup %759 }
 0x154   : > { %v527_v1 = vmul.f32 %v760_v0, %v526_v63 }
 0x156   : > { %531 = vst [vmem:[%s959_s5] sm:$0x1] %v527_v1  ;;  %v529_v3 = vmul.f32 %v527_v1, %v518_v57 }
 0x158   : > { %v530_v4 = vsub.f32 %v528_v2, %v529_v3 }
 0x15a   : > { %532 = vst [vmem:[%s960_s6] sm:$0x1] %v530_v4 }
 0x15b PF: > { %s17_s21 = sadd.s32 1, %s767_s21  }
 0x15c   : > { %p14_p6 = scmp.ge.s32.totalorder %s17_s21, 6  }
 0x15e   :  { %16 = sbr.rel (!%p14_p6) target bundleno = 1 (0x1), region = 90 }

</bundles_post_ra>
